<compile_context>
chip_gen: v5e
topology: v5e:2x2
jax: 0.10.0
libtpu: 0.0.40
codegen_flags: <defaults>
</compile_context>

<pallas_src>
import jax
import jax.numpy as jnp
from jax.experimental import pallas as pl
from jax.experimental.pallas import tpu as pltpu

_LANE = 128
_SUBLANE = 8


def _round_up(x, m):
    return ((x + m - 1) // m) * m


def _core_network_kernel(aq_ref, h0_ref, waq_ref, wh_ref, b_ref, out_ref, hcar_ref):
    """One chunk of T_CHUNK glimpse steps; hidden state carried across chunks in hcar_ref."""
    c = pl.program_id(0)
    t_chunk, b_pad, in_dim = aq_ref.shape

    # Seed the carried hidden state on the first chunk only.
    @pl.when(c == 0)
    def _():
        hcar_ref[...] = h0_ref[...]

    # Phase 1 (T-parallel): one big MXU matmul for the whole chunk's input
    # projection, bias (b_aq + b_h) folded in once per chunk.
    aq_flat = aq_ref[...].reshape(t_chunk * b_pad, in_dim)
    h1 = jnp.dot(aq_flat, waq_ref[...], preferred_element_type=jnp.float32) + b_ref[...]

    # Phase 2 (sequential recurrence): hidden state lives in vregs inside the
    # chunk; only the chunk-final state is written back to the VMEM carry.
    w_h = wh_ref[...]
    h_prev = hcar_ref[...]
    for t in range(t_chunk):  # static unroll, t_chunk is small
        h1_t = h1[t * b_pad:(t + 1) * b_pad, :]
        pre = h1_t + jnp.dot(h_prev, w_h, preferred_element_type=jnp.float32)
        h_prev = jnp.maximum(pre, 0.0)
        out_ref[t] = h_prev.astype(out_ref.dtype)
    hcar_ref[...] = h_prev


def core_network_forward_seq(aq_seq, h0, w_aq, b_aq, w_h, b_h, *, t_chunk=8):
    """
    Run T recurrent CoreNetwork steps in a single fused Pallas kernel.

    aq_seq: [T, B, input_size]   glimpse/question features per step
    h0:     [B, hidden_size]     initial hidden state
    w_aq:   [input_size,  hidden_size]  (PyTorch weight transposed)
    b_aq:   [hidden_size]
    w_h:    [hidden_size, hidden_size]  (PyTorch weight transposed)
    b_h:    [hidden_size]
    returns h_all: [T, B, hidden_size]  (h_t for every step)
    """
    T, B, input_size = aq_seq.shape
    hidden = w_aq.shape[1]
    assert w_aq.shape == (input_size, hidden)
    assert w_h.shape == (hidden, hidden)

    hid_pad = _round_up(hidden, _LANE)
    b_pad = _round_up(B, _SUBLANE)
    t_chunk = max(1, min(t_chunk, T))
    t_pad = _round_up(T, t_chunk)
    n_chunks = t_pad // t_chunk

    f32 = jnp.float32
    aq_p = aq_seq.astype(f32)
    if (t_pad, b_pad) != (T, B):
        # Pad only if the grid/sublane tiling requires it (feature dim stays unpadded).
        aq_p = jnp.zeros((t_pad, b_pad, input_size), f32).at[:T, :B].set(aq_p)
    h0_p = jnp.zeros((b_pad, hid_pad), f32).at[:B, :hidden].set(h0.astype(f32))
    waq_p = jnp.zeros((input_size, hid_pad), f32).at[:, :hidden].set(w_aq.astype(f32))
    wh_p = jnp.zeros((hid_pad, hid_pad), f32).at[:hidden, :hidden].set(w_h.astype(f32))
    b_p = jnp.zeros((1, hid_pad), f32).at[0, :hidden].set((b_aq + b_h).astype(f32))

    out = pl.pallas_call(
        _core_network_kernel,
        out_shape=jax.ShapeDtypeStruct((t_pad, b_pad, hid_pad), f32),
        grid=(n_chunks,),
        in_specs=[
            pl.BlockSpec((t_chunk, b_pad, input_size), lambda c: (c, 0, 0)),  # streamed per chunk
            pl.BlockSpec((b_pad, hid_pad), lambda c: (0, 0)),                 # resident h0
            pl.BlockSpec((input_size, hid_pad), lambda c: (0, 0)),            # resident W_aq
            pl.BlockSpec((hid_pad, hid_pad), lambda c: (0, 0)),               # resident W_h
            pl.BlockSpec((1, hid_pad), lambda c: (0, 0)),                     # resident fused bias
        ],
        out_specs=pl.BlockSpec((t_chunk, b_pad, hid_pad), lambda c: (c, 0, 0)),
        scratch_shapes=[pltpu.VMEM((b_pad, hid_pad), f32)],  # cross-chunk hidden carry
        # The chunk axis carries the recurrence -> MUST stay sequential ("arbitrary").
        compiler_params=pltpu.CompilerParams(dimension_semantics=("arbitrary",)),
    )(aq_p, h0_p, waq_p, wh_p, b_p)

    return out[:T, :B, :hidden].astype(aq_seq.dtype)


def core_network_forward(aq_t, h_t_prev, w_aq, b_aq, w_h, b_h):
    """Single-step forward with the exact PyTorch module semantics (T = 1)."""
    return core_network_forward_seq(aq_t[None], h_t_prev, w_aq, b_aq, w_h, b_h)[0]


if __name__ == "__main__":
    key = jax.random.PRNGKey(0)
    k1, k2, k3, k4, k5, k6 = jax.random.split(key, 6)

    B = 8
    input_size = 64
    hidden_size = 32
    T = 6  # recurrent glimpse steps fused into one pallas_call

    # Synthetic parameters (nn.Linear weights stored transposed as [in, out]).
    w_aq = jax.random.normal(k1, (input_size, hidden_size), jnp.float32) * 0.1
    b_aq = jax.random.normal(k2, (hidden_size,), jnp.float32) * 0.1
    w_h = jax.random.normal(k3, (hidden_size, hidden_size), jnp.float32) * 0.1
    b_h = jax.random.normal(k4, (hidden_size,), jnp.float32) * 0.1

    aq_seq = jax.random.normal(k5, (T, B, input_size), jnp.float32)
    h0 = jax.random.normal(k6, (B, hidden_size), jnp.float32)

    # Reference: apply the module step by step.
    def ref_step(aq_t, h_prev):
        return jnp.maximum(aq_t @ w_aq + b_aq + h_prev @ w_h + b_h, 0.0)

    ref_states = []
    h = h0
    for t in range(T):
        h = ref_step(aq_seq[t], h)
        ref_states.append(h)
    ref_all = jnp.stack(ref_states)

    # 1) Single-chunk path (T fits in one grid step).
    h_all = core_network_forward_seq(aq_seq, h0, w_aq, b_aq, w_h, b_h)
    h_all = jax.block_until_ready(h_all)
    assert h_all.shape == (T, B, hidden_size)
    assert jnp.allclose(h_all, ref_all, atol=1e-4, rtol=1e-4), "single-chunk mismatch vs reference"

    # 2) Multi-chunk path (exercises the cross-chunk VMEM hidden-state carry + T padding).
    h_all_c = core_network_forward_seq(aq_seq, h0, w_aq, b_aq, w_h, b_h, t_chunk=4)
    h_all_c = jax.block_until_ready(h_all_c)
    assert h_all_c.shape == (T, B, hidden_size)
    assert jnp.allclose(h_all_c, ref_all, atol=1e-4, rtol=1e-4), "multi-chunk mismatch vs reference"

    # 3) Single-step forward (exact module semantics).
    h_t = core_network_forward(aq_seq[0], h0, w_aq, b_aq, w_h, b_h)
    h_t = jax.block_until_ready(h_t)
    assert h_t.shape == (B, hidden_size)
    assert jnp.allclose(h_t, ref_step(aq_seq[0], h0), atol=1e-4, rtol=1e-4), "single-step mismatch"

    print("KERNEL_OK")
</pallas_src>

<mosaic_0001>
module attributes {stable_mosaic.version = 11 : i64} {
  func.func @_core_network_kernel(%arg0: i32, %arg1: memref<6x8x64xf32, #tpu.memory_space<vmem>>, %arg2: memref<8x128xf32, #tpu.memory_space<vmem>>, %arg3: memref<64x128xf32, #tpu.memory_space<vmem>>, %arg4: memref<128x128xf32, #tpu.memory_space<vmem>>, %arg5: memref<1x128xf32, #tpu.memory_space<vmem>>, %arg6: memref<6x8x128xf32, #tpu.memory_space<vmem>>, %arg7: memref<8x128xf32, #tpu.memory_space<vmem>>) attributes {dimension_semantics = [#tpu.dimension_semantics<arbitrary>], iteration_bounds = array<i64: 1>, scalar_prefetch = 0 : i64, scratch_operands = 1 : i64, tpu.core_type = #tpu.core_type<tc>, window_params = [{transform_indices = @transform_0, window_bounds = array<i64: 6, 8, 64>}, {pipeline_mode = #tpu.pipeline_mode<synchronous>, transform_indices = @transform_1, window_bounds = array<i64: 8, 128>}, {pipeline_mode = #tpu.pipeline_mode<synchronous>, transform_indices = @transform_2, window_bounds = array<i64: 64, 128>}, {pipeline_mode = #tpu.pipeline_mode<synchronous>, transform_indices = @transform_3, window_bounds = array<i64: 128, 128>}, {pipeline_mode = #tpu.pipeline_mode<synchronous>, transform_indices = @transform_4, window_bounds = array<i64: 1, 128>}, {transform_indices = @transform_5, window_bounds = array<i64: 6, 8, 128>}]} {
    %c0_i32 = arith.constant 0 : i32
    %0 = arith.cmpi eq, %arg0, %c0_i32 : i32
    %1 = arith.extui %0 : i1 to i32
    %c0_i32_0 = arith.constant 0 : i32
    %2 = arith.cmpi ne, %1, %c0_i32_0 : i32
    scf.if %2 {
      %c0_38 = arith.constant 0 : index
      %c0_39 = arith.constant 0 : index
      %61 = vector.load %arg2[%c0_38, %c0_39] : memref<8x128xf32, #tpu.memory_space<vmem>>, vector<8x128xf32>
      %c0_40 = arith.constant 0 : index
      %c0_41 = arith.constant 0 : index
      %62 = vector.load %arg7[%c0_40, %c0_41] : memref<8x128xf32, #tpu.memory_space<vmem>>, vector<8x128xf32>
      tpu.vector_store %arg7[%c0_40, %c0_41], %61 {strides = array<i32>} : memref<8x128xf32, #tpu.memory_space<vmem>>, vector<8x128xf32>,
    } else {
    }
    %c0 = arith.constant 0 : index
    %c0_1 = arith.constant 0 : index
    %c0_2 = arith.constant 0 : index
    %3 = vector.load %arg1[%c0, %c0_1, %c0_2] : memref<6x8x64xf32, #tpu.memory_space<vmem>>, vector<6x8x64xf32>
    %4 = vector.shape_cast %3 : vector<6x8x64xf32> to vector<48x64xf32>
    %c0_3 = arith.constant 0 : index
    %c0_4 = arith.constant 0 : index
    %5 = vector.load %arg3[%c0_3, %c0_4] : memref<64x128xf32, #tpu.memory_space<vmem>>, vector<64x128xf32>
    %cst = arith.constant dense<0.000000e+00> : vector<48x128xf32>
    %6 = tpu.matmul %4, %5, %cst {dimension_numbers = #tpu.dot_dimension_numbers<[1], [0], [0], [1], [0, 0, 1, 1], [], []>} : vector<48x64xf32>, vector<64x128xf32>, vector<48x128xf32> -> vector<48x128xf32>
    %c0_5 = arith.constant 0 : index
    %c0_6 = arith.constant 0 : index
    %7 = vector.load %arg5[%c0_5, %c0_6] : memref<1x128xf32, #tpu.memory_space<vmem>>, vector<1x128xf32>
    %8 = vector.broadcast %7 : vector<1x128xf32> to vector<48x128xf32>
    %9 = arith.addf %6, %8 : vector<48x128xf32>
    %c0_7 = arith.constant 0 : index
    %c0_8 = arith.constant 0 : index
    %10 = vector.load %arg4[%c0_7, %c0_8] : memref<128x128xf32, #tpu.memory_space<vmem>>, vector<128x128xf32>
    %c0_9 = arith.constant 0 : index
    %c0_10 = arith.constant 0 : index
    %11 = vector.load %arg7[%c0_9, %c0_10] : memref<8x128xf32, #tpu.memory_space<vmem>>, vector<8x128xf32>
    %12 = vector.extract_strided_slice %9 {offsets = [0, 0], sizes = [8, 128], strides = [1, 1]} : vector<48x128xf32> to vector<8x128xf32>
    %cst_11 = arith.constant dense<0.000000e+00> : vector<8x128xf32>
    %13 = tpu.matmul %11, %10, %cst_11 {dimension_numbers = #tpu.dot_dimension_numbers<[1], [0], [0], [1], [0, 0, 1, 1], [], []>} : vector<8x128xf32>, vector<128x128xf32>, vector<8x128xf32> -> vector<8x128xf32>
    %14 = arith.addf %12, %13 : vector<8x128xf32>
    %cst_12 = arith.constant 0.000000e+00 : f32
    %15 = vector.broadcast %cst_12 : f32 to vector<8x128xf32>
    %16 = arith.maximumf %14, %15 : vector<8x128xf32>
    %c0_13 = arith.constant 0 : index
    %c0_14 = arith.constant 0 : index
    %c0_15 = arith.constant 0 : index
    %17 = vector.load %arg6[%c0_13, %c0_14, %c0_15] : memref<6x8x128xf32, #tpu.memory_space<vmem>>, vector<1x8x128xf32>
    %18 = vector.shape_cast %17 : vector<1x8x128xf32> to vector<8x128xf32>
    %19 = vector.shape_cast %16 : vector<8x128xf32> to vector<1x8x128xf32>
    tpu.vector_store %arg6[%c0_13, %c0_14, %c0_15], %19 {strides = array<i32>} : memref<6x8x128xf32, #tpu.memory_space<vmem>>, vector<1x8x128xf32>,
    %20 = vector.extract_strided_slice %9 {offsets = [8, 0], sizes = [8, 128], strides = [1, 1]} : vector<48x128xf32> to vector<8x128xf32>
    %cst_16 = arith.constant dense<0.000000e+00> : vector<8x128xf32>
    %21 = tpu.matmul %16, %10, %cst_16 {dimension_numbers = #tpu.dot_dimension_numbers<[1], [0], [0], [1], [0, 0, 1, 1], [], []>} : vector<8x128xf32>, vector<128x128xf32>, vector<8x128xf32> -> vector<8x128xf32>
    %22 = arith.addf %20, %21 : vector<8x128xf32>
    %cst_17 = arith.constant 0.000000e+00 : f32
    %23 = vector.broadcast %cst_17 : f32 to vector<8x128xf32>
    %24 = arith.maximumf %22, %23 : vector<8x128xf32>
    %c1 = arith.constant 1 : index
    %c0_18 = arith.constant 0 : index
    %c0_19 = arith.constant 0 : index
    %25 = vector.load %arg6[%c1, %c0_18, %c0_19] : memref<6x8x128xf32, #tpu.memory_space<vmem>>, vector<1x8x128xf32>
    %26 = vector.shape_cast %25 : vector<1x8x128xf32> to vector<8x128xf32>
    %27 = vector.shape_cast %24 : vector<8x128xf32> to vector<1x8x128xf32>
    tpu.vector_store %arg6[%c1, %c0_18, %c0_19], %27 {strides = array<i32>} : memref<6x8x128xf32, #tpu.memory_space<vmem>>, vector<1x8x128xf32>,
    %28 = vector.extract_strided_slice %9 {offsets = [16, 0], sizes = [8, 128], strides = [1, 1]} : vector<48x128xf32> to vector<8x128xf32>
    %cst_20 = arith.constant dense<0.000000e+00> : vector<8x128xf32>
    %29 = tpu.matmul %24, %10, %cst_20 {dimension_numbers = #tpu.dot_dimension_numbers<[1], [0], [0], [1], [0, 0, 1, 1], [], []>} : vector<8x128xf32>, vector<128x128xf32>, vector<8x128xf32> -> vector<8x128xf32>
    %30 = arith.addf %28, %29 : vector<8x128xf32>
    %cst_21 = arith.constant 0.000000e+00 : f32
    %31 = vector.broadcast %cst_21 : f32 to vector<8x128xf32>
    %32 = arith.maximumf %30, %31 : vector<8x128xf32>
    %c2 = arith.constant 2 : index
    %c0_22 = arith.constant 0 : index
    %c0_23 = arith.constant 0 : index
    %33 = vector.load %arg6[%c2, %c0_22, %c0_23] : memref<6x8x128xf32, #tpu.memory_space<vmem>>, vector<1x8x128xf32>
    %34 = vector.shape_cast %33 : vector<1x8x128xf32> to vector<8x128xf32>
    %35 = vector.shape_cast %32 : vector<8x128xf32> to vector<1x8x128xf32>
    tpu.vector_store %arg6[%c2, %c0_22, %c0_23], %35 {strides = array<i32>} : memref<6x8x128xf32, #tpu.memory_space<vmem>>, vector<1x8x128xf32>,
    %36 = vector.extract_strided_slice %9 {offsets = [24, 0], sizes = [8, 128], strides = [1, 1]} : vector<48x128xf32> to vector<8x128xf32>
    %cst_24 = arith.constant dense<0.000000e+00> : vector<8x128xf32>
    %37 = tpu.matmul %32, %10, %cst_24 {dimension_numbers = #tpu.dot_dimension_numbers<[1], [0], [0], [1], [0, 0, 1, 1], [], []>} : vector<8x128xf32>, vector<128x128xf32>, vector<8x128xf32> -> vector<8x128xf32>
    %38 = arith.addf %36, %37 : vector<8x128xf32>
    %cst_25 = arith.constant 0.000000e+00 : f32
    %39 = vector.broadcast %cst_25 : f32 to vector<8x128xf32>
    %40 = arith.maximumf %38, %39 : vector<8x128xf32>
    %c3 = arith.constant 3 : index
    %c0_26 = arith.constant 0 : index
    %c0_27 = arith.constant 0 : index
    %41 = vector.load %arg6[%c3, %c0_26, %c0_27] : memref<6x8x128xf32, #tpu.memory_space<vmem>>, vector<1x8x128xf32>
    %42 = vector.shape_cast %41 : vector<1x8x128xf32> to vector<8x128xf32>
    %43 = vector.shape_cast %40 : vector<8x128xf32> to vector<1x8x128xf32>
    tpu.vector_store %arg6[%c3, %c0_26, %c0_27], %43 {strides = array<i32>} : memref<6x8x128xf32, #tpu.memory_space<vmem>>, vector<1x8x128xf32>,
    %44 = vector.extract_strided_slice %9 {offsets = [32, 0], sizes = [8, 128], strides = [1, 1]} : vector<48x128xf32> to vector<8x128xf32>
    %cst_28 = arith.constant dense<0.000000e+00> : vector<8x128xf32>
    %45 = tpu.matmul %40, %10, %cst_28 {dimension_numbers = #tpu.dot_dimension_numbers<[1], [0], [0], [1], [0, 0, 1, 1], [], []>} : vector<8x128xf32>, vector<128x128xf32>, vector<8x128xf32> -> vector<8x128xf32>
    %46 = arith.addf %44, %45 : vector<8x128xf32>
    %cst_29 = arith.constant 0.000000e+00 : f32
    %47 = vector.broadcast %cst_29 : f32 to vector<8x128xf32>
    %48 = arith.maximumf %46, %47 : vector<8x128xf32>
    %c4 = arith.constant 4 : index
    %c0_30 = arith.constant 0 : index
    %c0_31 = arith.constant 0 : index
    %49 = vector.load %arg6[%c4, %c0_30, %c0_31] : memref<6x8x128xf32, #tpu.memory_space<vmem>>, vector<1x8x128xf32>
    %50 = vector.shape_cast %49 : vector<1x8x128xf32> to vector<8x128xf32>
    %51 = vector.shape_cast %48 : vector<8x128xf32> to vector<1x8x128xf32>
    tpu.vector_store %arg6[%c4, %c0_30, %c0_31], %51 {strides = array<i32>} : memref<6x8x128xf32, #tpu.memory_space<vmem>>, vector<1x8x128xf32>,
    %52 = vector.extract_strided_slice %9 {offsets = [40, 0], sizes = [8, 128], strides = [1, 1]} : vector<48x128xf32> to vector<8x128xf32>
    %cst_32 = arith.constant dense<0.000000e+00> : vector<8x128xf32>
    %53 = tpu.matmul %48, %10, %cst_32 {dimension_numbers = #tpu.dot_dimension_numbers<[1], [0], [0], [1], [0, 0, 1, 1], [], []>} : vector<8x128xf32>, vector<128x128xf32>, vector<8x128xf32> -> vector<8x128xf32>
    %54 = arith.addf %52, %53 : vector<8x128xf32>
    %cst_33 = arith.constant 0.000000e+00 : f32
    %55 = vector.broadcast %cst_33 : f32 to vector<8x128xf32>
    %56 = arith.maximumf %54, %55 : vector<8x128xf32>
    %c5 = arith.constant 5 : index
    %c0_34 = arith.constant 0 : index
    %c0_35 = arith.constant 0 : index
    %57 = vector.load %arg6[%c5, %c0_34, %c0_35] : memref<6x8x128xf32, #tpu.memory_space<vmem>>, vector<1x8x128xf32>
    %58 = vector.shape_cast %57 : vector<1x8x128xf32> to vector<8x128xf32>
    %59 = vector.shape_cast %56 : vector<8x128xf32> to vector<1x8x128xf32>
    tpu.vector_store %arg6[%c5, %c0_34, %c0_35], %59 {strides = array<i32>} : memref<6x8x128xf32, #tpu.memory_space<vmem>>, vector<1x8x128xf32>,
    %c0_36 = arith.constant 0 : index
    %c0_37 = arith.constant 0 : index
    %60 = vector.load %arg7[%c0_36, %c0_37] : memref<8x128xf32, #tpu.memory_space<vmem>>, vector<8x128xf32>
    tpu.vector_store %arg7[%c0_36, %c0_37], %56 {strides = array<i32>} : memref<8x128xf32, #tpu.memory_space<vmem>>, vector<8x128xf32>,
    return
  }
  func.func @transform_0(%arg0: i32) -> (i32, i32, i32) {
    %c0_i32 = arith.constant 0 : i32
    %c0_i32_0 = arith.constant 0 : i32
    %c0_i32_1 = arith.constant 0 : i32
    return %arg0, %c0_i32, %c0_i32_0 : i32, i32, i32
  }
  func.func @transform_1(%arg0: i32) -> (i32, i32) {
    %c0_i32 = arith.constant 0 : i32
    %c0_i32_0 = arith.constant 0 : i32
    %c0_i32_1 = arith.constant 0 : i32
    return %c0_i32, %c0_i32_0 : i32, i32
  }
  func.func @transform_2(%arg0: i32) -> (i32, i32) {
    %c0_i32 = arith.constant 0 : i32
    %c0_i32_0 = arith.constant 0 : i32
    %c0_i32_1 = arith.constant 0 : i32
    return %c0_i32, %c0_i32_0 : i32, i32
  }
  func.func @transform_3(%arg0: i32) -> (i32, i32) {
    %c0_i32 = arith.constant 0 : i32
    %c0_i32_0 = arith.constant 0 : i32
    %c0_i32_1 = arith.constant 0 : i32
    return %c0_i32, %c0_i32_0 : i32, i32
  }
  func.func @transform_4(%arg0: i32) -> (i32, i32) {
    %c0_i32 = arith.constant 0 : i32
    %c0_i32_0 = arith.constant 0 : i32
    %c0_i32_1 = arith.constant 0 : i32
    return %c0_i32, %c0_i32_0 : i32, i32
  }
  func.func @transform_5(%arg0: i32) -> (i32, i32, i32) {
    %c0_i32 = arith.constant 0 : i32
    %c0_i32_0 = arith.constant 0 : i32
    %c0_i32_1 = arith.constant 0 : i32
    return %arg0, %c0_i32, %c0_i32_0 : i32, i32, i32
  }
}

</mosaic_0001>

<bundles_post_ra>
// kernel: tpu_custom_call.1
= control target key start
LH: loop header
LB: loop body
LE: loop exit
PB: predicated region body
PF: predicated region fallthrough
CT: control target
= control target key end

     0   :  { %10 = vsyncpa [#allocation4], 0  ;;  %s685_s0 = inlined_call_operand.hbm [shape: f32[6,8,64], index: 0, kind: input, shape index: {}]   ;;  %s686_s1 = inlined_call_operand.hbm [shape: f32[8,128], index: 1, kind: input, shape index: {}]   ;;  %s687_s2 = inlined_call_operand.hbm [shape: f32[64,128], index: 2, kind: input, shape index: {}]   ;;  %s688_s3 = inlined_call_operand.hbm [shape: f32[128,128], index: 3, kind: input, shape index: {}]   ;;  %s689_s4 = inlined_call_operand.vmem [shape: f32[1,128], index: 4, kind: input, shape index: {}]   ;;  %s690_s5 = inlined_call_operand.hbm [shape: f32[6,8,128], index: 5, kind: output, shape index: {}]  }
   0x1   :  { %11 = vsyncpa [#allocation7], 0 }
   0x2   :  { %12 = vsyncpa [#allocation10], 0  ;;  %s32_s20 = sshll.u32 %s686_s1, 4  ;;  %s33_s20 = int_to_ptr.hbm [resolvable:$true] %s32_s20 }
   0x3   :  { %13 = vsyncpa [#allocation5], 0  ;;  %s492_s21 = smov [#allocation6]   ;;  %s18_s25 = sshll.u32 %s685_s0, 4  ;;  %s19_s25 = int_to_ptr.hbm [resolvable:$true] %s18_s25 }
   0x4   :  { %s34_s22 = sshll.u32 %s492_s21, 4  ;;  %s493_s26 = smov [#allocation3]   ;;  %s35_s22 = int_to_ptr.vmem [resolvable:$true] %s34_s22 }
   0x5   :  { %37 = dma.hbm_to_vmem [thread:$0]  %s33_s20, 128, %s35_s22, [#allocation7]  }
   0x6   :  { %s20_s27 = sshll.u32 %s493_s26, 4  ;;  %s494_s28 = smov 128   ;;  %s21_s27 = int_to_ptr.vmem [resolvable:$true] %s20_s27 }
   0x7   :  { %s495_s29 = smov 8   ;;  %s42_s6 = sshll.u32 %s687_s2, 4  ;;  %s43_s6 = int_to_ptr.hbm [resolvable:$true] %s42_s6 }
   0x8   :  { %26 = dma.hbm_to_vmem [thread:$0]  %s19_s25, 768, %s21_s27, [#allocation4], %s494_s28, %s494_s28, %s495_s29  }
   0x9   :  { %s496_s7 = smov [#allocation8]   ;;  %s55_s10 = sshll.u32 %s688_s3, 4  ;;  %s56_s10 = int_to_ptr.hbm [resolvable:$true] %s55_s10 }
   0xa   :  { %s44_s8 = sshll.u32 %s496_s7, 4  ;;  %s497_s11 = smov [#allocation9]   ;;  %s45_s8 = int_to_ptr.vmem [resolvable:$true] %s44_s8 }
   0xb   :  { %50 = dma.hbm_to_vmem [thread:$0]  %s43_s6, 1024, %s45_s8, [#allocation7], %s494_s28, %s494_s28, %s495_s29  }
   0xc   :  { %s57_s12 = sshll.u32 %s497_s11, 4  ;;  %s58_s12 = int_to_ptr.vmem [resolvable:$true] %s57_s12 }
   0xd   :  { %63 = dma.hbm_to_vmem [thread:$0]  %s56_s10, 2048, %s58_s12, [#allocation10], %s494_s28, %s494_s28, %s495_s29  }
   0xe   :  { %484 = dma.done.wait [#allocation4], 768  }
   0xf   :  { %485 = vsyncadd [#allocation4], 4294966528 }
  0x10   :  { %486 = dma.done.wait [#allocation7], 1152  }
  0x11   :  { %487 = vsyncadd [#allocation7], 4294966144 }
  0x12   :  { %488 = dma.done.wait [#allocation10], 2048  }
  0x13   :  { %489 = vsyncadd [#allocation10], 4294965248  ;;  %v550_v0 = vld [vmem:[#allocation9 + $0x78] sm:$0xff]  ;;  %v552_v1 = vld [vmem:[#allocation9 + $0x70] sm:$0xff]  ;;  %vm106_vm0 = vcmask 523264   ;;  %s327_s16 = sshll.u32 %s690_s5, 4  ;;  %s328_s16 = int_to_ptr.hbm [resolvable:$true] %s327_s16 }
  0x14   :  { %177 = vmatpush.msra.mxu1 %v550_v0  ;;  %200 = vmatpush.msra.mxu2 %v550_v0  ;;  %v556_v2 = vld [vmem:[#allocation9 + $0x68] sm:$0xff]  ;;  %v101_v3 = vld [vmem:[#allocation8 + $0x38] sm:$0xff]  ;;  %v100_v4 = vld [vmem:[#allocation8 + $0x30] sm:$0xff] }
  0x15   :  { %133 = vmatpush.msra.mxu0 %v101_v3  ;;  %v559_v5 = vld [vmem:[#allocation9 + $0x60] sm:$0xff]  ;;  %v99_v6 = vld [vmem:[#allocation8 + $0x28] sm:$0xff]  ;;  %348 = vmatpush.msra.mxu3 %v101_v3  ;;  %v563_v7 = vld [vmem:[#allocation9 + $0x58] sm:$0xff] }
  0x16   :  { %178 = vmatpush.msra.mxu1 %v552_v1  ;;  %201 = vmatpush.msra.mxu2 %v552_v1  ;;  %v98_v8 = vld [vmem:[#allocation8 + $0x20] sm:$0xff]  ;;  %v567_v9 = vld [vmem:[#allocation9 + $0x50] sm:$0xff]  ;;  %v97_v10 = vld [vmem:[#allocation8 + $0x18] sm:$0xff] }
  0x17   :  { %134 = vmatpush.msra.mxu0 %v100_v4  ;;  %349 = vmatpush.msra.mxu3 %v100_v4  ;;  %v571_v11 = vld [vmem:[#allocation9 + $0x48] sm:$0xff]  ;;  %v96_v12 = vld [vmem:[#allocation8 + $0x10] sm:$0xff]  ;;  %v575_v13 = vld [vmem:[#allocation9 + $0x40] sm:$0xff] }
  0x18   :  { %179 = vmatpush.msra.mxu1 %v556_v2  ;;  %202 = vmatpush.msra.mxu2 %v556_v2  ;;  %v95_v14 = vld [vmem:[#allocation8 + $0x8] sm:$0xff]  ;;  %v579_v15 = vld [vmem:[#allocation9 + $0x38] sm:$0xff]  ;;  %v94_v16 = vld [vmem:[#allocation8] sm:$0xff] }
  0x19   :  { %135 = vmatpush.msra.mxu0 %v99_v6  ;;  %350 = vmatpush.msra.mxu3 %v99_v6  ;;  %v88_v17 = vld [vmem:[#allocation3] sm:$0xff]  ;;  %v583_v18 = vld [vmem:[#allocation9 + $0x30] sm:$0xff]  ;;  %v592_v20 = vld [vmem:[#allocation9 + $0x20] sm:$0xff] }
  0x1a   :  { %180 = vmatpush.msra.mxu1 %v559_v5  ;;  %203 = vmatpush.msra.mxu2 %v559_v5  ;;  %v587_v19 = vld [vmem:[#allocation9 + $0x28] sm:$0xff]  ;;  %v598_v21 = vld [vmem:[#allocation9 + $0x18] sm:$0xff]  ;;  %v604_v22 = vld [vmem:[#allocation9 + $0x10] sm:$0xff] }
  0x1b   :  { %136 = vmatpush.msra.mxu0 %v98_v8  ;;  %351 = vmatpush.msra.mxu3 %v98_v8  ;;  %v610_v23 = vld [vmem:[#allocation9 + $0x8] sm:$0xff]  ;;  %v160_v24 = vld [vmem:[#allocation9] sm:$0xff]  ;;  %v86_v25 = vld [vmem:[#allocation6] sm:$0xff] }
  0x1c   :  { %181 = vmatpush.msra.mxu1 %v563_v7  ;;  %204 = vmatpush.msra.mxu2 %v563_v7  ;;  %v89_v26 = vld [vmem:[#allocation3 + $0x8] sm:$0xff]  ;;  %v92_v27 = vld [vmem:[#allocation3 + $0x20] sm:$0xff]  ;;  %v90_v35 = vld [vmem:[#allocation3 + $0x10] sm:$0xff] }
  0x1d   :  { %137 = vmatpush.msra.mxu0 %v97_v10  ;;  %352 = vmatpush.msra.mxu3 %v97_v10  ;;  %v93_v28 = vld [vmem:[#allocation3 + $0x28] sm:$0xff]  ;;  %v363_v29 = vld [vmem:[%s689_s4] ss:$0 sm:$0xff]  ;;  %v91_v36 = vld [vmem:[#allocation3 + $0x18] sm:$0xff]  ;;  %s498_s4 = smov [#allocation11]  }
  0x1e   :  { %182 = vmatpush.msra.mxu1 %v567_v9  ;;  %205 = vmatpush.msra.mxu2 %v567_v9  ;;  %s325_s13 = sshll.u32 %s498_s4, 4  ;;  %s326_s13 = int_to_ptr.vmem [resolvable:$true] %s325_s13 }
  0x1f   :  { %138 = vmatpush.msra.mxu0 %v96_v12  ;;  %353 = vmatpush.msra.mxu3 %v96_v12 }
  0x20   :  { %183 = vmatpush.msra.mxu1 %v571_v11  ;;  %206 = vmatpush.msra.mxu2 %v571_v11 }
  0x21   :  { %139 = vmatpush.msra.mxu0 %v95_v14  ;;  %354 = vmatpush.msra.mxu3 %v95_v14 }
  0x22   :  { %184 = vmatpush.msra.mxu1 %v575_v13  ;;  %207 = vmatpush.msra.mxu2 %v575_v13 }
  0x23   :  { %140 = vmatpush.msra.mxu0 %v94_v16  ;;  %355 = vmatpush.msra.mxu3 %v94_v16 }
  0x24   :  { %185 = vmatpush.msra.mxu1 %v579_v15  ;;  %342 = vmatmul.msk.f32.vlgmr.msra.gmra.mxu0 %vm106_vm0, %v88_v17 }
  0x25   :  { %208 = vmatpush.msra.mxu2 %v579_v15  ;;  %224 = vmatpush.msrb.mxu3 %v550_v0 }
  0x26   :  { %186 = vmatpush.msra.mxu1 %v583_v18  ;;  %248 = vmatpush.msrb.mxu0 %v550_v0 }
  0x27   :  { %209 = vmatpush.msra.mxu2 %v583_v18  ;;  %225 = vmatpush.msrb.mxu3 %v552_v1 }
  0x28   :  { %187 = vmatpush.msra.mxu1 %v587_v19  ;;  %249 = vmatpush.msrb.mxu0 %v552_v1 }
  0x29   :  { %210 = vmatpush.msra.mxu2 %v587_v19  ;;  %226 = vmatpush.msrb.mxu3 %v556_v2 }
  0x2a   :  { %188 = vmatpush.msra.mxu1 %v592_v20  ;;  %250 = vmatpush.msrb.mxu0 %v556_v2 }
  0x2b   :  { %211 = vmatpush.msra.mxu2 %v592_v20  ;;  %227 = vmatpush.msrb.mxu3 %v559_v5 }
  0x2c   :  { %189 = vmatpush.msra.mxu1 %v598_v21  ;;  %251 = vmatpush.msrb.mxu0 %v559_v5 }
  0x2d   :  { %212 = vmatpush.msra.mxu2 %v598_v21  ;;  %228 = vmatpush.msrb.mxu3 %v563_v7 }
  0x2e   :  { %190 = vmatpush.msra.mxu1 %v604_v22  ;;  %252 = vmatpush.msrb.mxu0 %v563_v7 }
  0x2f   :  { %213 = vmatpush.msra.mxu2 %v604_v22  ;;  %229 = vmatpush.msrb.mxu3 %v567_v9 }
  0x30   :  { %191 = vmatpush.msra.mxu1 %v610_v23  ;;  %253 = vmatpush.msrb.mxu0 %v567_v9 }
  0x31   :  { %214 = vmatpush.msra.mxu2 %v610_v23  ;;  %230 = vmatpush.msrb.mxu3 %v571_v11 }
  0x32   :  { %192 = vmatpush.msra.mxu1 %v160_v24  ;;  %254 = vmatpush.msrb.mxu0 %v571_v11 }
  0x33   :  { %193 = vmatmul.f32.vlgmr.msra.gmra.mxu1 %v86_v25  ;;  %215 = vmatpush.msra.mxu2 %v160_v24 }
  0x34   :  { %272 = vmatpush.msrb.mxu1 %v550_v0  ;;  %231 = vmatpush.msrb.mxu3 %v575_v13 }
  0x35   :  { %296 = vmatpush.msrb.mxu2 %v550_v0  ;;  %255 = vmatpush.msrb.mxu0 %v575_v13 }
  0x36   :  { %273 = vmatpush.msrb.mxu1 %v552_v1  ;;  %232 = vmatpush.msrb.mxu3 %v579_v15 }
  0x37   :  { %297 = vmatpush.msrb.mxu2 %v552_v1  ;;  %256 = vmatpush.msrb.mxu0 %v579_v15 }
  0x38   :  { %274 = vmatpush.msrb.mxu1 %v556_v2  ;;  %233 = vmatpush.msrb.mxu3 %v583_v18 }
  0x39   :  { %298 = vmatpush.msrb.mxu2 %v556_v2  ;;  %257 = vmatpush.msrb.mxu0 %v583_v18 }
  0x3a   :  { %275 = vmatpush.msrb.mxu1 %v559_v5  ;;  %234 = vmatpush.msrb.mxu3 %v587_v19 }
  0x3b   :  { %299 = vmatpush.msrb.mxu2 %v559_v5  ;;  %258 = vmatpush.msrb.mxu0 %v587_v19 }
  0x3c   :  { %276 = vmatpush.msrb.mxu1 %v563_v7  ;;  %235 = vmatpush.msrb.mxu3 %v592_v20 }
  0x3d   :  { %300 = vmatpush.msrb.mxu2 %v563_v7  ;;  %259 = vmatpush.msrb.mxu0 %v592_v20 }
  0x3e   :  { %277 = vmatpush.msrb.mxu1 %v567_v9  ;;  %236 = vmatpush.msrb.mxu3 %v598_v21 }
  0x3f   :  { %301 = vmatpush.msrb.mxu2 %v567_v9  ;;  %260 = vmatpush.msrb.mxu0 %v598_v21 }
  0x40   :  { %278 = vmatpush.msrb.mxu1 %v571_v11  ;;  %237 = vmatpush.msrb.mxu3 %v604_v22 }
  0x41   :  { %302 = vmatpush.msrb.mxu2 %v571_v11  ;;  %261 = vmatpush.msrb.mxu0 %v604_v22 }
  0x42   :  { %279 = vmatpush.msrb.mxu1 %v575_v13  ;;  %238 = vmatpush.msrb.mxu3 %v610_v23 }
  0x43   :  { %303 = vmatpush.msrb.mxu2 %v575_v13  ;;  %262 = vmatpush.msrb.mxu0 %v610_v23 }
  0x44   :  { %280 = vmatpush.msrb.mxu1 %v579_v15  ;;  %239 = vmatpush.msrb.mxu3 %v160_v24 }
  0x45   :  { %304 = vmatpush.msrb.mxu2 %v579_v15  ;;  %263 = vmatpush.msrb.mxu0 %v160_v24 }
  0x46   :  { %281 = vmatpush.msrb.mxu1 %v583_v18  ;;  %343 = vmatmul.msk.f32.gmra.mxu0 %vm106_vm0, %v89_v26 }
  0x47   :  { %305 = vmatpush.msrb.mxu2 %v583_v18  ;;  %346 = vmatmul.msk.f32.vlgmr.msra.gmra.mxu3 %vm106_vm0, %v92_v27 }
  0x48   :  { %282 = vmatpush.msrb.mxu1 %v587_v19 }
  0x49   :  { %306 = vmatpush.msrb.mxu2 %v587_v19 }
  0x4a   :  { %283 = vmatpush.msrb.mxu1 %v592_v20 }
  0x4b   :  { %307 = vmatpush.msrb.mxu2 %v592_v20 }
  0x4c   :  { %284 = vmatpush.msrb.mxu1 %v598_v21 }
  0x4d   :  { %308 = vmatpush.msrb.mxu2 %v598_v21 }
  0x4e   :  { %285 = vmatpush.msrb.mxu1 %v604_v22  ;;  %344 = vmatmul.msk.f32.gmra.mxu0 %vm106_vm0, %v90_v35 }
  0x4f   :  { %309 = vmatpush.msrb.mxu2 %v604_v22  ;;  %347 = vmatmul.msk.f32.gmra.mxu3 %vm106_vm0, %v93_v28 }
  0x50   :  { %286 = vmatpush.msrb.mxu1 %v610_v23 }
  0x51   :  { %310 = vmatpush.msrb.mxu2 %v610_v23 }
  0x52   :  { %287 = vmatpush.msrb.mxu1 %v160_v24 }
  0x53   :  { %311 = vmatpush.msrb.mxu2 %v160_v24 }
  0x56   :  { %345 = vmatmul.msk.f32.gmra.mxu0 %vm106_vm0, %v91_v36 }
  0xa1   :  { %v142_v30 = vpop.f32.mrf.mxu0 }
  0xa2   :  { %v143_v31 = vadd.f32 %v363_v29, %v142_v30 }
  0xb0   :  { %v194_v32 = vpop.f32.mrf.mxu1 }
  0xb1   :  { %v197_v33 = vadd.f32 %v194_v32, %v143_v31 }
  0xb3   :  { %v198_v34 = vmax.f32 %v197_v33, 0.0 }
  0xb5   :  { %199 = vst [vmem:[#allocation11] sm:$0xff] %v198_v34  ;;  %216 = vmatmul.f32.vlgmr.msra.gmra.mxu2 %v198_v34 }
  0xc3   :  { %v145_v37 = vpop.f32.mrf.mxu0 }
  0xc4   :  { %v146_v38 = vadd.f32 %v363_v29, %v145_v37 }
  0xca   :  { %v154_v42 = vpop.f32.mrf.mxu3 }
  0xcb   :  { %v148_v44 = vpop.f32.mrf.mxu0  ;;  %v155_v54 = vadd.f32 %v363_v29, %v154_v42 }
  0xcc   :  { %v149_v45 = vadd.f32 %v363_v29, %v148_v44 }
  0xd2   :  { %v157_v43 = vpop.f32.mrf.mxu3 }
  0xd3   :  { %v151_v49 = vpop.f32.mrf.mxu0  ;;  %v158_v58 = vadd.f32 %v363_v29, %v157_v43 }
  0xd4   :  { %v152_v50 = vadd.f32 %v363_v29, %v151_v49 }
 0x138   :  { %v217_v39 = vpop.f32.mrf.mxu2 }
 0x139   :  { %v220_v40 = vadd.f32 %v217_v39, %v146_v38 }
 0x13b   :  { %v221_v41 = vmax.f32 %v220_v40, 0.0 }
 0x13d   :  { %223 = vst [vmem:[#allocation11 + $0x8] sm:$0xff] %v221_v41  ;;  %240 = vmatmul.f32.vlgmr.msrb.gmra.mxu3 %v221_v41 }
 0x1c0   :  { %v241_v46 = vpop.f32.mrf.mxu3 }
 0x1c1   :  { %v244_v47 = vadd.f32 %v241_v46, %v149_v45 }
 0x1c3   :  { %v245_v48 = vmax.f32 %v244_v47, 0.0 }
 0x1c5   :  { %247 = vst [vmem:[#allocation11 + $0x10] sm:$0xff] %v245_v48  ;;  %264 = vmatmul.f32.vlgmr.msrb.gmra.mxu0 %v245_v48 }
 0x242   :  { %v265_v51 = vpop.f32.mrf.mxu0 }
 0x243   :  { %v268_v52 = vadd.f32 %v265_v51, %v152_v50 }
 0x245   :  { %v269_v53 = vmax.f32 %v268_v52, 0.0 }
 0x247   :  { %271 = vst [vmem:[#allocation11 + $0x18] sm:$0xff] %v269_v53  ;;  %288 = vmatmul.f32.vlgmr.msrb.gmra.mxu1 %v269_v53 }
 0x2c4   :  { %v289_v55 = vpop.f32.mrf.mxu1 }
 0x2c5   :  { %v292_v56 = vadd.f32 %v289_v55, %v155_v54 }
 0x2c7   :  { %v293_v57 = vmax.f32 %v292_v56, 0.0 }
 0x2c9   :  { %295 = vst [vmem:[#allocation11 + $0x20] sm:$0xff] %v293_v57  ;;  %312 = vmatmul.f32.vlgmr.msrb.gmra.mxu2 %v293_v57 }
 0x34c   :  { %v313_v59 = vpop.f32.mrf.mxu2 }
 0x34d   :  { %v316_v60 = vadd.f32 %v313_v59, %v158_v58 }
 0x34f   :  { %v317_v61 = vmax.f32 %v316_v60, 0.0 }
 0x351   :  { %319 = vst [vmem:[#allocation11 + $0x28] sm:$0xff] %v317_v61 }
 0x352   :  { %333 = dma.vmem_to_hbm [thread:$0]  %s326_s13, 768, %s328_s16, [#allocation5], %s494_s28, %s494_s28, %s495_s29  }
 0x353   :  { %490 = dma.done.wait [#allocation5], 768  }
 0x354   :  { %491 = vsyncadd [#allocation5], 4294966528 }
 0x355   :  { %338 = vsyncpa [#allocation4], 1 }
 0x356   :  { %339 = vsyncpa [#allocation7], 1 }
 0x357   :  { %340 = vsyncpa [#allocation10], 1 }
 0x358   :  { %341 = vsyncpa [#allocation5], 1 }

</bundles_post_ra>
